<compile_context>
chip_gen: v5e
topology: v5e:2x2
jax: 0.10.0
libtpu: 0.0.40
codegen_flags: <defaults>
</compile_context>

<pallas_src>
import functools

import jax
import jax.numpy as jnp
from jax.experimental import pallas as pl
from jax.experimental.pallas import tpu as pltpu


def _dice_sums_kernel(preds_ref, tgt_ref, acc_ref, *,
                      background_adjustment, mask_invalid):
    j = pl.program_id(1)

    @pl.when(j == 0)
    def _():
        acc_ref[...] = jnp.zeros_like(acc_ref)

    p = preds_ref[...].astype(jnp.float32)          # (C, T)
    t = tgt_ref[...]                                # (1, T) int32
    c_dim, t_dim = p.shape

    # softmax over the class (sublane) axis
    m = jnp.max(p, axis=0, keepdims=True)           # (1, T)
    e = jnp.exp(p - m)                              # (C, T)
    denom = jnp.sum(e, axis=0, keepdims=True)       # (1, T)
    sm = e * pl.reciprocal(denom, approx=True)      # (C, T), EUP vrcp

    cls = jax.lax.broadcasted_iota(jnp.int32, (c_dim, t_dim), 0)
    onehot = (t == cls).astype(jnp.float32)         # (C, T)

    if mask_invalid:
        # Padded pixels carry target = -1; zero out their softmax contribution.
        sm = sm * (t >= 0).astype(jnp.float32)

    if background_adjustment is not None:
        # pred_flat -= background_adjustment * pred_flat * is_background
        sm = sm * (1.0 - background_adjustment * (t == 0).astype(jnp.float32))

    inter = jnp.sum(sm * onehot, axis=-1, keepdims=True)    # (C, 1)
    psum = jnp.sum(sm, axis=-1, keepdims=True)              # (C, 1)
    tsum = jnp.sum(onehot, axis=-1, keepdims=True)          # (C, 1)

    acc_ref[:, 0:1] += inter
    acc_ref[:, 1:2] += psum
    acc_ref[:, 2:3] += tsum


def multiclass_dice_loss(preds, targets, *, smooth=1.0,
                         background_adjustment=None, tile_bytes=2 << 20):
    """preds: (B, C, H, W) float logits (or (C, H, W)); targets: (B, H, W) int labels."""
    if preds.ndim == 3:
        preds = preds[None, ...]
    if targets.ndim == 2:
        targets = targets[None, ...]
    B, C, H, W = preds.shape
    HW = H * W

    # Free reshapes (no transpose): pixels end up on the lane axis.
    preds3 = preds.reshape(B, C, HW)
    tgt3 = targets.reshape(B, 1, HW).astype(jnp.int32)
    # TODO(synk): storing targets as int8 in HBM would shave a few % more HBM
    # traffic; kept int32 here for layout safety of the (1, T) block.

    itemsize = jnp.dtype(preds.dtype).itemsize
    if HW * C * itemsize <= tile_bytes:
        # Whole image fits in one tile; block can equal the full dim (no 128
        # alignment requirement, no padding).
        t = HW
        hw_pad = HW
    else:
        t = (tile_bytes // (C * itemsize)) // 128 * 128
        t = int(max(128, min(t, 256 * 1024)))
        hw_pad = pl.cdiv(HW, t) * t

    needs_mask = hw_pad != HW
    if needs_mask:
        pad = hw_pad - HW
        preds3 = jnp.pad(preds3, ((0, 0), (0, 0), (0, pad)))
        tgt3 = jnp.pad(tgt3, ((0, 0), (0, 0), (0, pad)), constant_values=-1)

    n_tiles = hw_pad // t

    kernel = functools.partial(_dice_sums_kernel,
                               background_adjustment=background_adjustment,
                               mask_invalid=needs_mask)

    # Output: per-batch partial sums (B, C, 3) = [intersection, pred_sum, target_sum]
    partial = pl.pallas_call(
        kernel,
        out_shape=jax.ShapeDtypeStruct((B, C, 3), jnp.float32),
        grid_spec=pltpu.PrefetchScalarGridSpec(
            num_scalar_prefetch=0,
            grid=(B, n_tiles),
            in_specs=[
                pl.BlockSpec((None, C, t), lambda b, j: (b, 0, j)),
                pl.BlockSpec((None, 1, t), lambda b, j: (b, 0, j)),
            ],
            out_specs=pl.BlockSpec((None, C, 3), lambda b, j: (b, 0, 0)),
        ),
        compiler_params=pltpu.CompilerParams(
            dimension_semantics=("parallel", "arbitrary")),
    )(preds3, tgt3)

    sums = jnp.sum(partial, axis=0)          # (C, 3)
    inter, psum, tsum = sums[:, 0], sums[:, 1], sums[:, 2]
    # skip background class 0; dice_loss = mean_c (1 - dice_c) over c = 1..C-1
    dice = (2.0 * inter[1:] + smooth) / (psum[1:] + tsum[1:] + smooth)
    return jnp.mean(1.0 - dice)


def _reference_loss(preds, targets, smooth=1.0, background_adjustment=None):
    if preds.ndim == 3:
        preds = preds[None, ...]
    sm = jax.nn.softmax(preds.astype(jnp.float32), axis=1)
    C = preds.shape[1]
    loss = 0.0
    is_bg = (targets == 0).reshape(-1).astype(jnp.float32)
    for c in range(1, C):
        pf = sm[:, c, :, :].reshape(-1)
        tf = (targets == c).astype(jnp.float32).reshape(-1)
        if background_adjustment is not None:
            pf = pf - background_adjustment * pf * is_bg
        inter = jnp.sum(pf * tf)
        dice = (2.0 * inter + smooth) / (jnp.sum(pf) + jnp.sum(tf) + smooth)
        loss = loss + (1.0 - dice)
    return loss / (C - 1)


if __name__ == "__main__":
    key = jax.random.PRNGKey(0)
    k1, k2, k3, k4 = jax.random.split(key, 4)

    # Main check: B=2, C=4, 16x16 spatial (single tile per image).
    B, C, H, W = 2, 4, 16, 16
    preds = jax.random.normal(k1, (B, C, H, W), dtype=jnp.float32)
    targets = jax.random.randint(k2, (B, H, W), 0, C, dtype=jnp.int32)

    loss = multiclass_dice_loss(preds, targets, smooth=1.0)
    loss = jax.block_until_ready(loss)
    ref = _reference_loss(preds, targets, smooth=1.0)
    assert jnp.allclose(loss, ref, atol=1e-3, rtol=1e-3), (loss, ref)

    # background_adjustment path.
    loss_ba = multiclass_dice_loss(preds, targets, smooth=1.0,
                                   background_adjustment=0.35)
    loss_ba = jax.block_until_ready(loss_ba)
    ref_ba = _reference_loss(preds, targets, smooth=1.0,
                             background_adjustment=0.35)
    assert jnp.allclose(loss_ba, ref_ba, atol=1e-3, rtol=1e-3), (loss_ba, ref_ba)

    # Multi-tile + ragged-tail path (forced tiny tile): HW=400 is not a
    # multiple of the 128-pixel tile -> pad + in-kernel mask.
    B2, C2, H2, W2 = 1, 3, 20, 20
    preds2 = jax.random.normal(k3, (B2, C2, H2, W2), dtype=jnp.float32)
    targets2 = jax.random.randint(k4, (B2, H2, W2), 0, C2, dtype=jnp.int32)
    loss2 = multiclass_dice_loss(preds2, targets2, smooth=1.0, tile_bytes=2048)
    loss2 = jax.block_until_ready(loss2)
    ref2 = _reference_loss(preds2, targets2, smooth=1.0)
    assert jnp.allclose(loss2, ref2, atol=1e-3, rtol=1e-3), (loss2, ref2)

    print("KERNEL_OK")
</pallas_src>

<mosaic_0001>
module attributes {stable_mosaic.version = 11 : i64} {
  func.func @_dice_sums_kernel(%arg0: i32, %arg1: i32, %arg2: memref<1x4x256xf32, #tpu.memory_space<vmem>>, %arg3: memref<1x1x256xi32, #tpu.memory_space<vmem>>, %arg4: memref<1x4x3xf32, #tpu.memory_space<vmem>>) attributes {dimension_semantics = [#tpu.dimension_semantics<parallel>, #tpu.dimension_semantics<arbitrary>], iteration_bounds = array<i64: 2, 1>, scalar_prefetch = 0 : i64, scratch_operands = 0 : i64, tpu.core_type = #tpu.core_type<tc>, window_params = [{transform_indices = @transform_0, window_bounds = array<i64: 1, 4, 256>}, {transform_indices = @transform_1, window_bounds = array<i64: 1, 1, 256>}, {transform_indices = @transform_2, window_bounds = array<i64: 1, 4, 3>}]} {
    %c0_i32 = arith.constant 0 : i32
    %0 = arith.cmpi eq, %arg1, %c0_i32 : i32
    %1 = arith.extui %0 : i1 to i32
    %c0_i32_0 = arith.constant 0 : i32
    %2 = arith.cmpi ne, %1, %c0_i32_0 : i32
    scf.if %2 {
      %cst_26 = arith.constant 0.000000e+00 : f32
      %47 = vector.broadcast %cst_26 : f32 to vector<4x3xf32>
      %c0_27 = arith.constant 0 : index
      %c0_28 = arith.constant 0 : index
      %c0_29 = arith.constant 0 : index
      %48 = vector.load %arg4[%c0_27, %c0_28, %c0_29] : memref<1x4x3xf32, #tpu.memory_space<vmem>>, vector<1x4x3xf32>
      %49 = vector.shape_cast %48 : vector<1x4x3xf32> to vector<4x3xf32>
      %50 = vector.shape_cast %47 : vector<4x3xf32> to vector<1x4x3xf32>
      tpu.vector_store %arg4[%c0_27, %c0_28, %c0_29], %50 {strides = array<i32>} : memref<1x4x3xf32, #tpu.memory_space<vmem>>, vector<1x4x3xf32>,
    } else {
    }
    %c0 = arith.constant 0 : index
    %c0_1 = arith.constant 0 : index
    %c0_2 = arith.constant 0 : index
    %3 = vector.load %arg2[%c0, %c0_1, %c0_2] : memref<1x4x256xf32, #tpu.memory_space<vmem>>, vector<1x4x256xf32>
    %4 = vector.shape_cast %3 : vector<1x4x256xf32> to vector<4x256xf32>
    %c0_3 = arith.constant 0 : index
    %c0_4 = arith.constant 0 : index
    %c0_5 = arith.constant 0 : index
    %5 = vector.load %arg3[%c0_3, %c0_4, %c0_5] : memref<1x1x256xi32, #tpu.memory_space<vmem>>, vector<1x1x256xi32>
    %6 = vector.shape_cast %5 : vector<1x1x256xi32> to vector<1x256xi32>
    %cst = arith.constant dense<0xFF800000> : vector<256xf32>
    %7 = vector.multi_reduction <maximumf>, %4, %cst [0] : vector<4x256xf32> to vector<256xf32>
    %8 = vector.shape_cast %7 : vector<256xf32> to vector<1x256xf32>
    %9 = vector.broadcast %8 : vector<1x256xf32> to vector<4x256xf32>
    %10 = arith.subf %4, %9 : vector<4x256xf32>
    %11 = math.exp %10 : vector<4x256xf32>
    %cst_6 = arith.constant dense<0.000000e+00> : vector<256xf32>
    %12 = vector.multi_reduction <add>, %11, %cst_6 [0] : vector<4x256xf32> to vector<256xf32>
    %13 = vector.shape_cast %12 : vector<256xf32> to vector<1x256xf32>
    %14 = tpu.reciprocal %13 {approx = true} : vector<1x256xf32> -> vector<1x256xf32>
    %15 = vector.broadcast %14 : vector<1x256xf32> to vector<4x256xf32>
    %16 = arith.mulf %11, %15 : vector<4x256xf32>
    %17 = tpu.iota {dimensions = array<i32: 0>} : vector<4x256xi32>
    %18 = vector.broadcast %6 : vector<1x256xi32> to vector<4x256xi32>
    %19 = arith.cmpi eq, %18, %17 : vector<4x256xi32>
    %20 = arith.extui %19 : vector<4x256xi1> to vector<4x256xi32>
    %21 = arith.sitofp %20 : vector<4x256xi32> to vector<4x256xf32>
    %22 = arith.mulf %16, %21 : vector<4x256xf32>
    %cst_7 = arith.constant dense<0.000000e+00> : vector<4xf32>
    %23 = vector.multi_reduction <add>, %22, %cst_7 [1] : vector<4x256xf32> to vector<4xf32>
    %24 = vector.shape_cast %23 : vector<4xf32> to vector<4x1xf32>
    %cst_8 = arith.constant dense<0.000000e+00> : vector<4xf32>
    %25 = vector.multi_reduction <add>, %16, %cst_8 [1] : vector<4x256xf32> to vector<4xf32>
    %26 = vector.shape_cast %25 : vector<4xf32> to vector<4x1xf32>
    %cst_9 = arith.constant dense<0.000000e+00> : vector<4xf32>
    %27 = vector.multi_reduction <add>, %21, %cst_9 [1] : vector<4x256xf32> to vector<4xf32>
    %28 = vector.shape_cast %27 : vector<4xf32> to vector<4x1xf32>
    %c0_10 = arith.constant 0 : index
    %c0_11 = arith.constant 0 : index
    %c0_12 = arith.constant 0 : index
    %29 = vector.load %arg4[%c0_10, %c0_11, %c0_12] : memref<1x4x3xf32, #tpu.memory_space<vmem>>, vector<1x4x1xf32>
    %30 = vector.shape_cast %29 : vector<1x4x1xf32> to vector<4x1xf32>
    %31 = arith.addf %30, %24 : vector<4x1xf32>
    %c0_13 = arith.constant 0 : index
    %c0_14 = arith.constant 0 : index
    %c0_15 = arith.constant 0 : index
    %32 = vector.load %arg4[%c0_13, %c0_14, %c0_15] : memref<1x4x3xf32, #tpu.memory_space<vmem>>, vector<1x4x1xf32>
    %33 = vector.shape_cast %32 : vector<1x4x1xf32> to vector<4x1xf32>
    %34 = vector.shape_cast %31 : vector<4x1xf32> to vector<1x4x1xf32>
    tpu.vector_store %arg4[%c0_13, %c0_14, %c0_15], %34 {strides = array<i32>} : memref<1x4x3xf32, #tpu.memory_space<vmem>>, vector<1x4x1xf32>,
    %c0_16 = arith.constant 0 : index
    %c0_17 = arith.constant 0 : index
    %c1 = arith.constant 1 : index
    %35 = vector.load %arg4[%c0_16, %c0_17, %c1] : memref<1x4x3xf32, #tpu.memory_space<vmem>>, vector<1x4x1xf32>
    %36 = vector.shape_cast %35 : vector<1x4x1xf32> to vector<4x1xf32>
    %37 = arith.addf %36, %26 : vector<4x1xf32>
    %c0_18 = arith.constant 0 : index
    %c0_19 = arith.constant 0 : index
    %c1_20 = arith.constant 1 : index
    %38 = vector.load %arg4[%c0_18, %c0_19, %c1_20] : memref<1x4x3xf32, #tpu.memory_space<vmem>>, vector<1x4x1xf32>
    %39 = vector.shape_cast %38 : vector<1x4x1xf32> to vector<4x1xf32>
    %40 = vector.shape_cast %37 : vector<4x1xf32> to vector<1x4x1xf32>
    tpu.vector_store %arg4[%c0_18, %c0_19, %c1_20], %40 {strides = array<i32>} : memref<1x4x3xf32, #tpu.memory_space<vmem>>, vector<1x4x1xf32>,
    %c0_21 = arith.constant 0 : index
    %c0_22 = arith.constant 0 : index
    %c2 = arith.constant 2 : index
    %41 = vector.load %arg4[%c0_21, %c0_22, %c2] : memref<1x4x3xf32, #tpu.memory_space<vmem>>, vector<1x4x1xf32>
    %42 = vector.shape_cast %41 : vector<1x4x1xf32> to vector<4x1xf32>
    %43 = arith.addf %42, %28 : vector<4x1xf32>
    %c0_23 = arith.constant 0 : index
    %c0_24 = arith.constant 0 : index
    %c2_25 = arith.constant 2 : index
    %44 = vector.load %arg4[%c0_23, %c0_24, %c2_25] : memref<1x4x3xf32, #tpu.memory_space<vmem>>, vector<1x4x1xf32>
    %45 = vector.shape_cast %44 : vector<1x4x1xf32> to vector<4x1xf32>
    %46 = vector.shape_cast %43 : vector<4x1xf32> to vector<1x4x1xf32>
    tpu.vector_store %arg4[%c0_23, %c0_24, %c2_25], %46 {strides = array<i32>} : memref<1x4x3xf32, #tpu.memory_space<vmem>>, vector<1x4x1xf32>,
    return
  }
  func.func @transform_0(%arg0: i32, %arg1: i32) -> (i32, i32, i32) {
    %c0_i32 = arith.constant 0 : i32
    %c0_i32_0 = arith.constant 0 : i32
    return %arg0, %c0_i32, %arg1 : i32, i32, i32
  }
  func.func @transform_1(%arg0: i32, %arg1: i32) -> (i32, i32, i32) {
    %c0_i32 = arith.constant 0 : i32
    %c0_i32_0 = arith.constant 0 : i32
    return %arg0, %c0_i32, %arg1 : i32, i32, i32
  }
  func.func @transform_2(%arg0: i32, %arg1: i32) -> (i32, i32, i32) {
    %c0_i32 = arith.constant 0 : i32
    %c0_i32_0 = arith.constant 0 : i32
    %c0_i32_1 = arith.constant 0 : i32
    return %arg0, %c0_i32, %c0_i32_0 : i32, i32, i32
  }
}

</mosaic_0001>

<bundles_post_ra>
// kernel: tpu_custom_call.1
= control target key start
LH: loop header
LB: loop body
LE: loop exit
PB: predicated region body
PF: predicated region fallthrough
CT: control target
= control target key end

     0   :  { %7 = vsyncpa [#allocation3], 0  ;;  %s790_s0 = inlined_call_operand.hbm [shape: f32[2,4,256], index: 0, kind: input, shape index: {}]   ;;  %s791_s1 = inlined_call_operand.hbm [shape: s32[2,1,256], index: 1, kind: input, shape index: {}]   ;;  %s792_s2 = inlined_call_operand.vmem [shape: f32[2,4,3], index: 2, kind: output, shape index: {}]  }
   0x1   :  { %9 = vsyncpa [#allocation3 + $0x1], 0 }
   0x2   :  { %10 = vsyncpa [#allocation5], 0 }
   0x3   :  { %12 = vsyncpa [#allocation5 + $0x1], 0  ;;  %s661_s9 = smov 0   ;;  %s663_s10 = smov 0  }
   0x4   :  { %s665_s11 = smov 0   ;;  %s667_s12 = smov 0  }
   0x5   :  { %s669_s13 = smov 0   ;;  %s671_s14 = smov 0  }
   0x6 LB: > { %s444_s15 = sadd.s32 4294967295, %s643_s14   ;;  %s30_s16 = sadd.s32 1, %s639_s13  ;;  %s643_s14 = sphi %s671_s14, %s18_s14   ;;  %s639_s13 = sphi %s669_s13, %s800_s13   ;;  %s635_s12 = sphi %s667_s12, %s799_s12   ;;  %s631_s11 = sphi %s665_s11, %s798_s11   ;;  %s627_s10 = sphi %s663_s10, %s797_s10   ;;  %s623_s9 = sphi %s661_s9, %s796_s9  }
   0x7   : > { %p32_p0 = scmp.ge.s32.totalorder %s30_s16, 2  ;;  %s39_s17 = sadd.s32 1, %s631_s11 }
   0x8   : > { %p46_p1 = scmp.ne.s32.totalorder %s631_s11, %s627_s10  ;;  %p47_p2 = scmp.eq.s32.totalorder %s643_s14, 0 }
   0x9   : > { %s802_s16 = smov (%p32_p0, %s30_s16), 0  ;;  %p52_p4 = scmp.ne.s32.totalorder %s627_s10, %s623_s9 }
   0xa   : > { %p697_p3 = por %p47_p2, %p46_p1  ;;  %s34_s19 = ssub.s32 %s639_s13, %s802_s16 }
   0xb   : > { %p53_p5 = scmp.eq.s32.totalorder %s444_s15, 0  ;;  %p37_p6 = scmp.eq.s32.totalorder %s34_s19, 0 }
   0xc   : > { %p473_p8 = scmp.lt.s32.totalorder %s643_s14, 2  ;;  %s130_s22 = sand.u32 1, %s631_s11  }
   0xd   : > { %p704_p7 = por %p53_p5, %p52_p4  ;;  %s461_s23 = sshll.u32 %s639_s13, 3 }
   0xe   : > { %s710_s21 = scalar_select %p37_p6, %s631_s11, %s39_s17  }
   0xf   : > { %s448_s24 = sshll.u32 %s130_s22, 3  ;;  %s141_s27 = scalar_lea.hbm %s790_s0, %s461_s23 }
  0x10   : > { %s143_s28 = sshll.u32 %s141_s27, 4  ;;  %s134_s29 = scalar_lea.vmem [#allocation2], %s448_s24  ;;  %s144_s28 = int_to_ptr.hbm [resolvable:$true] %s143_s28 }
  0x11   : > { %s145_s30 = sshll.u32 %s134_s29, 4  ;;  %p719_p9 = pnand %p473_p8, %p697_p3  ;;  %s146_s30 = int_to_ptr.vmem [resolvable:$true] %s145_s30 }
  0x12   : > { %p453_p10 = scmp.ge.s32.totalorder %s643_s14, 1  ;;  %p171_p11 = scmp.lt.s32.totalorder %s643_s14, 3 }
  0x13   : > { %s451_s4 = sshll.u32 %s130_s22, 1  ;;  %s131_s5 = scalar_lea.sflag [#allocation3], %s130_s22 }
  0x14   : > { %469 = dma.hbm_to_vmem [thread:$0]  (!%p719_p9), %s144_s28, 128, %s146_s30, %s131_s5  }
  0x15   : > { %p172_p12 = pnand %p453_p10, %p171_p11  ;;  %s452_s6 = sshll.u32 %s639_s13, 1 }
  0x16   : > { %s156_s7 = scalar_lea.vmem [#allocation4], %s451_s4  ;;  %s162_s17 = scalar_lea.hbm %s791_s1, %s452_s6 }
  0x17   : > { %s166_s8 = sshll.u32 %s156_s7, 4  ;;  %s164_s18 = sshll.u32 %s162_s17, 4  ;;  %s167_s8 = int_to_ptr.vmem [resolvable:$true] %s166_s8  ;;  %s165_s18 = int_to_ptr.hbm [resolvable:$true] %s164_s18 }
  0x18   : > { %s153_s19 = scalar_lea.sflag [#allocation5], %s130_s22  ;;  %175 = sbr.rel (%p172_p12) target bundleno = 255 (0xff), region = 28 }
  0x19   : > { %472 = dma.hbm_to_vmem [thread:$0]  (!%p719_p9), %s165_s18, 32, %s167_s8, %s153_s19  }
  0x1a   : > { %s177_s23 = sand.u32 (!%p172_p12), 1, %s627_s10  }
  0x1b   : > { %s454_s24 = sshll.u32 (!%p172_p12), %s177_s23, 3  ;;  %s178_s25 = scalar_lea.sflag (!%p172_p12), [#allocation3], %s177_s23 }
  0x1c   : > { %s181_s26 = scalar_lea.vmem (!%p172_p12), [#allocation2], %s454_s24 }
  0x1d   : > { %614 = dma.done.wait (%p704_p7), %s178_s25, 128  }
  0x1e   : > { %616 = vsyncadd (%p704_p7), %s178_s25, 4294967168  ;;  %s455_s27 = sshll.u32 %s177_s23, 1  ;;  %s188_s28 = scalar_lea.sflag [#allocation5], %s177_s23 }
  0x1f   : > { %s738_s29 = scalar_lea.vmem [#allocation4], %s455_s27 }
  0x20   : > { %618 = dma.done.wait (%p704_p7), %s188_s28, 32  }
  0x21   : > { %620 = vsyncadd (%p704_p7), %s188_s28, 4294967264  ;;  %v229_v0 = vld [vmem:[%s181_s26] sm:$0xff]  ;;  %vm237_vm0 = vcmask 1043456   ;;  %v288_v28 = vlaneseq  ;;  %p219_p13 = scmp.lt.s32.totalorder %s635_s12, 1  ;;  %v230_v31 = vld [vmem:[%s738_s29] sm:$0x3] }
  0x22   : > { %232 = vst [vmem:[#allocation1] ss:$2 sm:$0xff] %v229_v0  ;;  %v290_v37 = vperm.slane %v230_v31, 0  ;;  %v291_v38 = vperm.slane %v230_v31, 1  ;;  %v645_v43 = vmov 0.0   ;;  %vm227_vm3 = vcmask 19456  }
  0x23   : > { %v289_v34 = vshrl.u32 %v288_v28, 7  ;;  %s804_s12 = smov (!%p219_p13, %s635_s12), 1  ;;  %vm333_vm4 = vcmask 3072   ;;  %vm337_vm5 = vcmask 11272   ;;  %vm341_vm6 = vcmask 19472  }
  0x24   : > { %s456_s20 = sshll.u32 %s804_s12, 2 }
  0x25   : > { %vm292_vm1 = vcmp.eq.s32.totalorder %v290_v37, %v289_v34  ;;  %vm293_vm2 = vcmp.eq.s32.totalorder %v291_v38, %v289_v34  ;;  %s755_s3 = scalar_lea.vmem %s792_s2, %s456_s20 }
  0x26   : > { %v457_v44 = vsel %vm292_vm1, 1.0, %v645_v43  ;;  %v458_v45 = vsel %vm293_vm2, 1.0, %v645_v43  ;;  %228 = vst.msk [vmem:[%s755_s3] sm:$0xf] %vm227_vm3, %v645_v43 }
  0x27   : > { %v326_v46 = vsel %vm237_vm0, %v457_v44, 0.0  ;;  %v327_v47 = vsel %vm237_vm0, %v458_v45, 0.0  ;;  %v300_v50 = vrot.slane %v458_v45, 4 }
  0x28   : > { %v328_v48 = vadd.f32 %v327_v47, %v326_v46 }
  0x29   : > { %v233_v1 = vld.sshfl [vmem:[#allocation1] sm:$0xff pattern:$0x75316420]  ;;  %v234_v2 = vld.sshfl [vmem:[#allocation1 + $0x8] sm:$0xff pattern:$0x75316420]  ;;  %v301_v54 = vsel %vm237_vm0, %v457_v44, %v300_v50 }
  0x2a   : > { %v238_v3 = vsel %vm237_vm0, %v233_v1, -inf  ;;  %v245_v4 = vsel %vm237_vm0, %v234_v2, -inf  ;;  %329 = vadd.xlane.f32.xlu1 %v328_v48 }
  0x2b   : > { %v239_v5 = vrot.slane %v238_v3, 4  ;;  %v246_v6 = vrot.slane %v245_v4, 4 }
  0x2d   : > { %v240_v7 = vmax.f32 %v238_v3, %v239_v5  ;;  %v247_v8 = vmax.f32 %v245_v4, %v246_v6  ;;  %v331_v3 = vld [vmem:[%s755_s3] sm:$0xf] }
  0x2f   : > { %v241_v9 = vrot.slane %v240_v7, 2  ;;  %v248_v10 = vrot.slane %v247_v8, 2 }
  0x31   : > { %v242_v11 = vmax.f32 %v240_v7, %v241_v9  ;;  %v249_v12 = vmax.f32 %v247_v8, %v248_v10 }
  0x33   : > { %v243_v13 = vrot.slane %v242_v11, 1  ;;  %v250_v14 = vrot.slane %v249_v12, 1 }
  0x35   : > { %v244_v15 = vmax.f32 %v242_v11, %v243_v13  ;;  %v251_v16 = vmax.f32 %v249_v12, %v250_v14 }
  0x37   : > { %v254_v17 = vrot.slane %v251_v16, 4 }
  0x39   : > { %v255_v18 = vsel %vm237_vm0, %v244_v15, %v254_v17 }
  0x3a   : > { %v257_v19 = vsub.f32 %v229_v0, %v255_v18 }
  0x3c   : > { %v258_v20 = vmul.f32 1.442695, %v257_v19 }
  0x3e   : > { %523 = vpow2.f32 %v258_v20 }
  0x44   : > { %v524_v21 = vpop.eup %523 }
  0x45   : > { %261 = vst [vmem:[#allocation1] ss:$2 sm:$0xff] %v524_v21 }
  0x4c   : > { %v262_v22 = vld.sshfl [vmem:[#allocation1] sm:$0xff pattern:$0x75316420]  ;;  %v263_v23 = vld.sshfl [vmem:[#allocation1 + $0x8] sm:$0xff pattern:$0x75316420] }
  0x4d   : > { %v266_v24 = vsel %vm237_vm0, %v262_v22, 0.0  ;;  %v273_v25 = vsel %vm237_vm0, %v263_v23, 0.0 }
  0x4e   : > { %v267_v26 = vrot.slane %v266_v24, 4  ;;  %v274_v27 = vrot.slane %v273_v25, 4 }
  0x50   : > { %v268_v29 = vadd.f32 %v267_v26, %v266_v24  ;;  %v275_v30 = vadd.f32 %v274_v27, %v273_v25 }
  0x52   : > { %v269_v32 = vrot.slane %v268_v29, 2  ;;  %v276_v33 = vrot.slane %v275_v30, 2 }
  0x54   : > { %v270_v35 = vadd.f32 %v269_v32, %v268_v29  ;;  %v277_v36 = vadd.f32 %v276_v33, %v275_v30 }
  0x56   : > { %v271_v39 = vrot.slane %v270_v35, 1  ;;  %v278_v40 = vrot.slane %v277_v36, 1 }
  0x58   : > { %v272_v41 = vadd.f32 %v271_v39, %v270_v35  ;;  %v279_v42 = vadd.f32 %v278_v40, %v277_v36 }
  0x5a   : > { %525 = vrcp.f32 %v272_v41 }
  0x5b   : > { %527 = vrcp.f32 %v279_v42 }
  0x60   : > { %v526_v49 = vpop.eup %525 }
  0x61   : > { %v528_v51 = vpop.eup %527 }
  0x62   : > { %v284_v52 = vrot.slane %v528_v51, 4 }
  0x64   : > { %v285_v53 = vsel %vm237_vm0, %v526_v49, %v284_v52 }
  0x65   : > { %v287_v55 = vmul.f32 %v524_v21, %v285_v53 }
  0x67   : > { %v303_v56 = vmul.f32 %v301_v54, %v287_v55 }
  0x69   : > { %305 = vst [vmem:[#allocation1] ss:$2 sm:$0xff] %v303_v56 }
  0x70   : > { %v306_v57 = vld.sshfl [vmem:[#allocation1] sm:$0xff pattern:$0x75316420]  ;;  %v307_v58 = vld.sshfl [vmem:[#allocation1 + $0x8] sm:$0xff pattern:$0x75316420] }
  0x71   : > { %v310_v59 = vsel %vm237_vm0, %v306_v57, 0.0  ;;  %v311_v60 = vsel %vm237_vm0, %v307_v58, 0.0  ;;  %316 = vst [vmem:[#allocation1] ss:$2 sm:$0xff] %v287_v55 }
  0x72   : > { %v312_v61 = vadd.f32 %v311_v60, %v310_v59 }
  0x74   : > { %313 = vadd.xlane.f32.xlu0 %v312_v61 }
  0x78   : > { %v317_v62 = vld.sshfl [vmem:[#allocation1] sm:$0xff pattern:$0x75316420]  ;;  %v318_v63 = vld.sshfl [vmem:[#allocation1 + $0x8] sm:$0xff pattern:$0x75316420] }
  0x79   : > { %v321_v0 = vsel %vm237_vm0, %v317_v62, 0.0  ;;  %v322_v1 = vsel %vm237_vm0, %v318_v63, 0.0 }
  0x7a   : > { %v323_v2 = vadd.f32 %v322_v1, %v321_v0 }
  0x7c   : > { %324 = vadd.xlane.f32.xlu0 %v323_v2 }
  0x9d   : > { %v330_v9 = vpop.xlane.xlu1 %329 }
  0xe7   : > { %v314_v4 = vpop.xlane.xlu0 %313 }
  0xe8   : > { %v332_v5 = vadd.f32 %v331_v3, %v314_v4 }
  0xea   : > { %334 = vst.msk [vmem:[%s755_s3] sm:$0xf] %vm333_vm4, %v332_v5 }
  0xef   : > { %v325_v6 = vpop.xlane.xlu0 %324 }
  0xf1   : > { %v335_v7 = vld [vmem:[%s755_s3] sm:$0xf] }
  0xf2   : > { %v336_v8 = vadd.f32 %v335_v7, %v325_v6 }
  0xf4   : > { %338 = vst.msk [vmem:[%s755_s3] sm:$0xf] %vm337_vm5, %v336_v8 }
  0xfb   : > { %v339_v10 = vld [vmem:[%s755_s3] sm:$0xf] }
  0xfc   : > { %v340_v11 = vadd.f32 %v339_v10, %v330_v9 }
  0xfe   : > { %342 = vst.msk [vmem:[%s755_s3] sm:$0xf] %vm341_vm6, %v340_v11 }
  0xff PF: > { %s18_s14 = sadd.s32 1, %s643_s14   ;;  %s796_s9 = smov %s627_s10 }
 0x100   : > { %p15_p0 = scmp.ge.s32.totalorder %s18_s14, 4   ;;  %s797_s10 = smov %s631_s11 }
 0x101   : > { %s798_s11 = smov %s710_s21  ;;  %s799_s12 = smov %s639_s13 }
 0x102   : > { %s800_s13 = smov %s802_s16  ;;  %17 = sbr.rel (!%p15_p0) target bundleno = 6 (0x6), region = 85 }
 0x107   :  { %362 = vsyncpa [#allocation3], 1 }
 0x108   :  { %364 = vsyncpa [#allocation3 + $0x1], 1 }
 0x109   :  { %365 = vsyncpa [#allocation5], 1 }
 0x10a   :  { %367 = vsyncpa [#allocation5 + $0x1], 1 }

</bundles_post_ra>
